<compile_context>
chip_gen: v5e
topology: v5e:2x2
jax: 0.10.0
libtpu: 0.0.40
codegen_flags: <defaults>
</compile_context>

<pallas_src>
from functools import partial

import jax
import jax.numpy as jnp
from jax.experimental import pallas as pl
from jax.experimental.pallas import tpu as pltpu

LANES = 128        # lane-dense padding for hidden / class dims
NEG_BIG = -1e30    # mask value for padded class lanes (folded into b2)


def _round_up(x, m):
    return (x + m - 1) // m * m


def _pick_tiling(n, block_m, block_k):
    """Pick (n_pad, block_m, block_k) with block_m | block_k | n_pad."""
    n_lane = _round_up(max(n, 1), LANES)
    block_m = max(LANES, min(_round_up(block_m, LANES), n_lane))
    block_k = max(block_m, min(_round_up(block_k, LANES), n_lane))
    block_k = (block_k // block_m) * block_m        # block_m | block_k
    n_pad = _round_up(n, block_k)                   # divisible by both blocks
    # Keep >=2 row blocks when possible so v7x's two TensorCores both work.
    if n_pad // block_m < 2 and (n_pad // 2) % LANES == 0 and n_pad // 2 >= LANES:
        block_m = n_pad // 2
    return n_pad, block_m, block_k


def _vmem_limit_bytes(n_pad, f_pad, block_m, block_k, block_f):
    """Derive a scoped-VMEM limit from the tile footprint (floor 32 MiB)."""
    bf = 2  # bf16 bytes
    adj_stream = 2 * block_m * block_k * bf            # double-buffered adj
    slab = 2 * n_pad * LANES * bf                      # resident XW / HW2
    weights = 8 * LANES * LANES * bf                   # Wl, W2, biases (generous)
    acc = block_m * LANES * 4
    out = 2 * block_m * LANES * 4
    p12 = adj_stream + slab + weights + acc + out
    p0 = (2 * block_m * block_f * bf + 2 * block_f * LANES * bf
          + 2 * block_m * LANES * bf + block_m * LANES * 4)
    need = max(p12, p0)
    # NOTE: on v7x (64 MiB physical VMEM) keep tiles such that `need` <~48 MiB.
    return int(min(96 << 20, max(32 << 20, 2 * need)))


# ---------------------------------------------------------------------------
# Kernel 0: XW = X @ W1, tiled over rows and the feature (reduction) axis.
# ---------------------------------------------------------------------------
def feat_matmul_kernel(x_ref, w_ref, out_ref, acc_ref):
    f = pl.program_id(1)
    part = jnp.dot(x_ref[...], w_ref[...], preferred_element_type=jnp.float32)

    @pl.when(f == 0)
    def _():
        acc_ref[...] = part

    @pl.when(f != 0)
    def _():
        acc_ref[...] += part

    @pl.when(f == pl.num_programs(1) - 1)
    def _():
        out_ref[...] = acc_ref[...].astype(out_ref.dtype)


# ---------------------------------------------------------------------------
# Kernel 1: conv1 aggregation + GPR propagation + conv2 feature transform.
#   acc  = adj_block @ xw_block (+ b1 at k==0)        f32 accumulator
#   last k:  h = relu(acc)
#            k_hops x: h = relu(h @ (a*Wl) + a*bl) + (1-a) * h   (unrolled)
#            hw2 = h @ W2                              lane-dense bf16 store
# ---------------------------------------------------------------------------
def conv1_prop_kernel(adj_ref, xw_ref, b1_ref, wl_ref, bl_ref, w2_ref,
                      hw2_ref, acc_ref, *, k_hops, one_minus_alpha,
                      block_k, slab_resident):
    k = pl.program_id(1)

    if slab_resident:
        start = pl.multiple_of(k * block_k, block_k)
        xw_blk = xw_ref[pl.ds(start, block_k), :]       # resident slab slice
    else:
        xw_blk = xw_ref[...]                            # streamed block

    part = jnp.dot(adj_ref[...], xw_blk, preferred_element_type=jnp.float32)

    @pl.when(k == 0)
    def _():
        acc_ref[...] = part + b1_ref[...]               # bias folded into init

    @pl.when(k != 0)
    def _():
        acc_ref[...] += part

    @pl.when(k == pl.num_programs(1) - 1)
    def _():
        h = jnp.maximum(acc_ref[...], 0.0)              # (block_m, 128) f32
        wl = wl_ref[...]                                 # alpha pre-folded
        bl_b = jnp.broadcast_to(bl_ref[...], h.shape)    # hoisted broadcast
        for _ in range(k_hops):                          # static unroll
            hw = jnp.dot(h.astype(jnp.bfloat16), wl,
                         preferred_element_type=jnp.float32) + bl_b
            h = jnp.maximum(hw, 0.0) + one_minus_alpha * h
        hw2_ref[...] = jnp.dot(h.astype(jnp.bfloat16), w2_ref[...],
                               preferred_element_type=jnp.float32
                               ).astype(hw2_ref.dtype)


# ---------------------------------------------------------------------------
# Kernel 2: conv2 aggregation + masked log_softmax (lane-dense output).
# Padded class lanes carry a -1e30 bias (inside b2) so they vanish.
# ---------------------------------------------------------------------------
def conv2_logsoftmax_kernel(adj_ref, hw2_ref, b2_ref, out_ref, acc_ref,
                            *, block_k, slab_resident):
    k = pl.program_id(1)

    if slab_resident:
        start = pl.multiple_of(k * block_k, block_k)
        hw2_blk = hw2_ref[pl.ds(start, block_k), :]
    else:
        hw2_blk = hw2_ref[...]

    part = jnp.dot(adj_ref[...], hw2_blk, preferred_element_type=jnp.float32)

    @pl.when(k == 0)
    def _():
        acc_ref[...] = part + b2_ref[...]               # bias (+ -1e30 pads)

    @pl.when(k != 0)
    def _():
        acc_ref[...] += part

    @pl.when(k == pl.num_programs(1) - 1)
    def _():
        z = acc_ref[...]
        m = jnp.max(z, axis=1, keepdims=True)
        s = z - m
        lse = jnp.log(jnp.sum(jnp.exp(s), axis=1, keepdims=True))
        out_ref[...] = s - lse


# ---------------------------------------------------------------------------
# Wrapper: pad to lane/tile boundaries, launch the three tiled pallas_calls.
# ---------------------------------------------------------------------------
def gprgnn_forward(adj_norm, x, w1, b1, wl, bl, w2, b2,
                   *, k_hops=10, alpha=0.1,
                   block_m=512, block_k=1024, block_f=512):
    assert alpha >= 0.0, "alpha fold (alpha*relu(z)==relu(alpha*z)) needs alpha>=0"
    n, f_in = x.shape
    hid = w1.shape[1]
    c = w2.shape[1]
    cdt = jnp.bfloat16

    n_pad, block_m, block_k = _pick_tiling(n, block_m, block_k)
    block_f = max(LANES, min(_round_up(block_f, LANES), _round_up(f_in, LANES)))
    f_pad = _round_up(f_in, block_f)

    grid_rows = n_pad // block_m
    grid_k = n_pad // block_k
    grid_f = f_pad // block_f

    # Zero-padded bf16 MXU operands (f32 accumulation requested in-kernel).
    adj_p = jnp.zeros((n_pad, n_pad), cdt).at[:n, :n].set(adj_norm.astype(cdt))
    x_p = jnp.zeros((n_pad, f_pad), cdt).at[:n, :f_in].set(x.astype(cdt))
    w1_p = jnp.zeros((f_pad, LANES), cdt).at[:f_in, :hid].set(w1.astype(cdt))
    # alpha folded into the propagation weights / bias.
    wl_p = jnp.zeros((LANES, LANES), cdt).at[:hid, :hid].set(
        (alpha * wl).astype(cdt))
    w2_p = jnp.zeros((LANES, LANES), cdt).at[:hid, :c].set(w2.astype(cdt))
    # Biases stay f32 (elementwise math in f32 on all generations).
    b1_p = jnp.zeros((1, LANES), jnp.float32).at[:, :hid].set(
        jnp.reshape(b1, (1, hid)).astype(jnp.float32))
    bl_p = jnp.zeros((1, LANES), jnp.float32).at[:, :hid].set(
        (alpha * jnp.reshape(bl, (1, hid))).astype(jnp.float32))
    b2_p = jnp.full((1, LANES), NEG_BIG, jnp.float32).at[:, :c].set(
        jnp.reshape(b2, (1, c)).astype(jnp.float32))

    vmem_limit = _vmem_limit_bytes(n_pad, f_pad, block_m, block_k, block_f)
    cp_red = pltpu.CompilerParams(
        dimension_semantics=("parallel", "arbitrary"),
        vmem_limit_bytes=vmem_limit)

    # Keep XW / HW2 fully VMEM-resident (constant block index => DMA'd once)
    # unless the graph is so large the slab would blow the VMEM budget.
    slab_resident = (2 * n_pad * LANES * 2) <= (8 << 20)
    if slab_resident:
        slab_spec = pl.BlockSpec((n_pad, LANES), lambda i, k: (0, 0))
    else:
        slab_spec = pl.BlockSpec((block_k, LANES), lambda i, k: (k, 0))

    bytes_adj = n_pad * n_pad * 2
    ce0 = pl.CostEstimate(
        flops=2 * n_pad * f_pad * LANES, transcendentals=0,
        bytes_accessed=n_pad * f_pad * 2 + f_pad * LANES * 2 + n_pad * LANES * 2)
    ce1 = pl.CostEstimate(
        flops=2 * n_pad * n_pad * LANES
              + (k_hops + 1) * 2 * n_pad * LANES * LANES,
        transcendentals=0,
        bytes_accessed=bytes_adj + 3 * n_pad * LANES * 2)
    ce2 = pl.CostEstimate(
        flops=2 * n_pad * n_pad * LANES,
        transcendentals=n_pad * LANES,
        bytes_accessed=bytes_adj + n_pad * LANES * (2 + 4))

    # Phase 0: XW = X @ W1   (N_pad, 128) bf16, tiled over rows x features.
    xw = pl.pallas_call(
        feat_matmul_kernel,
        out_shape=jax.ShapeDtypeStruct((n_pad, LANES), cdt),
        grid=(grid_rows, grid_f),
        in_specs=[pl.BlockSpec((block_m, block_f), lambda i, f: (i, f)),
                  pl.BlockSpec((block_f, LANES), lambda i, f: (f, 0))],
        out_specs=pl.BlockSpec((block_m, LANES), lambda i, f: (i, 0)),
        scratch_shapes=[pltpu.VMEM((block_m, LANES), jnp.float32)],
        compiler_params=cp_red,
        cost_estimate=ce0,
    )(x_p, w1_p)

    # Phase 1: h = relu(adj @ XW + b1); k-hop propagation; hw2 = h @ W2.
    hw2 = pl.pallas_call(
        partial(conv1_prop_kernel, k_hops=k_hops,
                one_minus_alpha=1.0 - alpha,
                block_k=block_k, slab_resident=slab_resident),
        out_shape=jax.ShapeDtypeStruct((n_pad, LANES), cdt),
        grid=(grid_rows, grid_k),
        in_specs=[pl.BlockSpec((block_m, block_k), lambda i, k: (i, k)),
                  slab_spec,
                  pl.BlockSpec((1, LANES), lambda i, k: (0, 0)),
                  pl.BlockSpec((LANES, LANES), lambda i, k: (0, 0)),
                  pl.BlockSpec((1, LANES), lambda i, k: (0, 0)),
                  pl.BlockSpec((LANES, LANES), lambda i, k: (0, 0))],
        out_specs=pl.BlockSpec((block_m, LANES), lambda i, k: (i, 0)),
        scratch_shapes=[pltpu.VMEM((block_m, LANES), jnp.float32)],
        compiler_params=cp_red,
        cost_estimate=ce1,
    )(adj_p, xw, b1_p, wl_p, bl_p, w2_p)

    # Phase 2: out = log_softmax(adj @ HW2 + b2)   (lane-dense f32 output).
    out_p = pl.pallas_call(
        partial(conv2_logsoftmax_kernel,
                block_k=block_k, slab_resident=slab_resident),
        out_shape=jax.ShapeDtypeStruct((n_pad, LANES), jnp.float32),
        grid=(grid_rows, grid_k),
        in_specs=[pl.BlockSpec((block_m, block_k), lambda i, k: (i, k)),
                  slab_spec,
                  pl.BlockSpec((1, LANES), lambda i, k: (0, 0))],
        out_specs=pl.BlockSpec((block_m, LANES), lambda i, k: (i, 0)),
        scratch_shapes=[pltpu.VMEM((block_m, LANES), jnp.float32)],
        compiler_params=cp_red,
        cost_estimate=ce2,
    )(adj_p, hw2, b2_p)

    return out_p[:n, :c]


# ---------------------------------------------------------------------------
# Glue / reference (plain JAX, not the hot path)
# ---------------------------------------------------------------------------
def build_normalized_adjacency(src, dst, n):
    """Dense GCN-normalized adjacency: D^{-1/2} (A + I) D^{-1/2}."""
    a = jnp.zeros((n, n), jnp.float32)
    a = a.at[src, dst].set(1.0)
    a = jnp.maximum(a, a.T)                                   # undirected
    a = jnp.maximum(a, jnp.eye(n, dtype=jnp.float32))         # self-loops
    deg = a.sum(axis=1)
    dinv = 1.0 / jnp.sqrt(deg)
    return a * dinv[:, None] * dinv[None, :]


def gprgnn_reference(adj, x, w1, b1, wl, bl, w2, b2, *, k_hops, alpha):
    h = jax.nn.relu(adj @ (x @ w1) + b1)
    for _ in range(k_hops):
        h = alpha * jax.nn.relu(h @ wl + bl) + (1.0 - alpha) * h
    out = adj @ (h @ w2) + b2
    return jax.nn.log_softmax(out, axis=1)


if __name__ == "__main__":
    key = jax.random.PRNGKey(0)
    ks = jax.random.split(key, 9)

    # Small Citeseer-like problem; N=500 pads to 512 -> 2 row blocks x 1 k block.
    N, F_IN, HID, C = 500, 64, 16, 8
    K_HOPS, ALPHA = 10, 0.1

    x = jax.random.normal(ks[0], (N, F_IN), dtype=jnp.float32)

    num_edges = 2000
    src = jax.random.randint(ks[1], (num_edges,), 0, N)
    dst = jax.random.randint(ks[2], (num_edges,), 0, N)
    adj_norm = build_normalized_adjacency(src, dst, N)

    # conv1: GCNConv(F_IN, 16), conv2: GCNConv(16, C), linear: Linear(16, 16).
    w1 = 0.1 * jax.random.normal(ks[3], (F_IN, HID), dtype=jnp.float32)
    b1 = 0.01 * jax.random.normal(ks[4], (1, HID), dtype=jnp.float32)
    wl = 0.1 * jax.random.normal(ks[5], (HID, HID), dtype=jnp.float32)
    bl = 0.01 * jax.random.normal(ks[6], (1, HID), dtype=jnp.float32)
    w2 = 0.1 * jax.random.normal(ks[7], (HID, C), dtype=jnp.float32)
    b2 = 0.01 * jax.random.normal(ks[8], (1, C), dtype=jnp.float32)

    out = gprgnn_forward(adj_norm, x, w1, b1, wl, bl, w2, b2,
                         k_hops=K_HOPS, alpha=ALPHA)
    jax.block_until_ready(out)
    assert out.shape == (N, C)

    # Sanity 1: valid log_softmax rows (exp sums to 1).
    row_sums = jnp.exp(out).sum(axis=1)
    assert bool(jnp.all(jnp.abs(row_sums - 1.0) < 1e-3))

    # Sanity 2: matches the pure-JAX f32 reference (bf16 MXU operands -> loose tol).
    ref = gprgnn_reference(adj_norm, x, w1, b1, wl, bl, w2, b2,
                           k_hops=K_HOPS, alpha=ALPHA)
    assert bool(jnp.max(jnp.abs(out - ref)) < 5e-2)

    print("KERNEL_OK")
</pallas_src>

<mosaic_0001>
module attributes {stable_mosaic.version = 11 : i64} {
  func.func @feat_matmul_kernel(%arg0: i32, %arg1: i32, %arg2: memref<256x128xbf16, #tpu.memory_space<vmem>>, %arg3: memref<128x128xbf16, #tpu.memory_space<vmem>>, %arg4: memref<256x128xbf16, #tpu.memory_space<vmem>>, %arg5: memref<256x128xf32, #tpu.memory_space<vmem>>) attributes {dimension_semantics = [#tpu.dimension_semantics<parallel>, #tpu.dimension_semantics<arbitrary>], iteration_bounds = array<i64: 2, 1>, scalar_prefetch = 0 : i64, scratch_operands = 1 : i64, tpu.core_type = #tpu.core_type<tc>, window_params = [{transform_indices = @transform_0, window_bounds = array<i64: 256, 128>}, {transform_indices = @transform_1, window_bounds = array<i64: 128, 128>}, {transform_indices = @transform_2, window_bounds = array<i64: 256, 128>}]} {
    %c0 = arith.constant 0 : index
    %c0_0 = arith.constant 0 : index
    %0 = vector.load %arg2[%c0, %c0_0] : memref<256x128xbf16, #tpu.memory_space<vmem>>, vector<256x128xbf16>
    %c0_1 = arith.constant 0 : index
    %c0_2 = arith.constant 0 : index
    %1 = vector.load %arg3[%c0_1, %c0_2] : memref<128x128xbf16, #tpu.memory_space<vmem>>, vector<128x128xbf16>
    %cst = arith.constant dense<0.000000e+00> : vector<256x128xf32>
    %2 = tpu.matmul %0, %1, %cst {dimension_numbers = #tpu.dot_dimension_numbers<[1], [0], [0], [1], [0, 0, 1, 1], [], []>} : vector<256x128xbf16>, vector<128x128xbf16>, vector<256x128xf32> -> vector<256x128xf32>
    %c0_i32 = arith.constant 0 : i32
    %3 = arith.cmpi eq, %arg1, %c0_i32 : i32
    %4 = arith.extui %3 : i1 to i32
    %c0_i32_3 = arith.constant 0 : i32
    %5 = arith.cmpi ne, %4, %c0_i32_3 : i32
    scf.if %5 {
      %c0_8 = arith.constant 0 : index
      %c0_9 = arith.constant 0 : index
      %12 = vector.load %arg5[%c0_8, %c0_9] : memref<256x128xf32, #tpu.memory_space<vmem>>, vector<256x128xf32>
      tpu.vector_store %arg5[%c0_8, %c0_9], %2 {strides = array<i32>} : memref<256x128xf32, #tpu.memory_space<vmem>>, vector<256x128xf32>,
    } else {
    }
    %c0_i32_4 = arith.constant 0 : i32
    %6 = arith.cmpi ne, %arg1, %c0_i32_4 : i32
    %7 = arith.extui %6 : i1 to i32
    %c0_i32_5 = arith.constant 0 : i32
    %8 = arith.cmpi ne, %7, %c0_i32_5 : i32
    scf.if %8 {
      %c0_8 = arith.constant 0 : index
      %c0_9 = arith.constant 0 : index
      %12 = vector.load %arg5[%c0_8, %c0_9] : memref<256x128xf32, #tpu.memory_space<vmem>>, vector<256x128xf32>
      %13 = arith.addf %12, %2 : vector<256x128xf32>
      %c0_10 = arith.constant 0 : index
      %c0_11 = arith.constant 0 : index
      %14 = vector.load %arg5[%c0_10, %c0_11] : memref<256x128xf32, #tpu.memory_space<vmem>>, vector<256x128xf32>
      tpu.vector_store %arg5[%c0_10, %c0_11], %13 {strides = array<i32>} : memref<256x128xf32, #tpu.memory_space<vmem>>, vector<256x128xf32>,
    } else {
    }
    %c0_i32_6 = arith.constant 0 : i32
    %9 = arith.cmpi eq, %arg1, %c0_i32_6 : i32
    %10 = arith.extui %9 : i1 to i32
    %c0_i32_7 = arith.constant 0 : i32
    %11 = arith.cmpi ne, %10, %c0_i32_7 : i32
    scf.if %11 {
      %c0_8 = arith.constant 0 : index
      %c0_9 = arith.constant 0 : index
      %12 = vector.load %arg5[%c0_8, %c0_9] : memref<256x128xf32, #tpu.memory_space<vmem>>, vector<256x128xf32>
      %13 = arith.truncf %12 : vector<256x128xf32> to vector<256x128xbf16>
      %c0_10 = arith.constant 0 : index
      %c0_11 = arith.constant 0 : index
      %14 = vector.load %arg4[%c0_10, %c0_11] : memref<256x128xbf16, #tpu.memory_space<vmem>>, vector<256x128xbf16>
      tpu.vector_store %arg4[%c0_10, %c0_11], %13 {strides = array<i32>} : memref<256x128xbf16, #tpu.memory_space<vmem>>, vector<256x128xbf16>,
    } else {
    }
    return
  }
  func.func @transform_0(%arg0: i32, %arg1: i32) -> (i32, i32) {
    %c0_i32 = arith.constant 0 : i32
    return %arg0, %arg1 : i32, i32
  }
  func.func @transform_1(%arg0: i32, %arg1: i32) -> (i32, i32) {
    %c0_i32 = arith.constant 0 : i32
    %c0_i32_0 = arith.constant 0 : i32
    return %arg1, %c0_i32 : i32, i32
  }
  func.func @transform_2(%arg0: i32, %arg1: i32) -> (i32, i32) {
    %c0_i32 = arith.constant 0 : i32
    %c0_i32_0 = arith.constant 0 : i32
    return %arg0, %c0_i32 : i32, i32
  }
}

</mosaic_0001>

<bundles_post_ra>
// kernel: tpu_custom_call.1
= control target key start
LH: loop header
LB: loop body
LE: loop exit
PB: predicated region body
PF: predicated region fallthrough
CT: control target
= control target key end

     0   :  { %7 = vsyncpa [#allocation4], 0  ;;  %s1533_s0 = inlined_call_operand.hbm [shape: bf16[512,128], index: 0, kind: input, shape index: {}]   ;;  %s1534_s1 = inlined_call_operand.hbm [shape: bf16[128,128], index: 1, kind: input, shape index: {}]   ;;  %s1535_s2 = inlined_call_operand.hbm [shape: bf16[512,128], index: 2, kind: output, shape index: {}]  }
   0x1   :  { %9 = vsyncpa [#allocation4 + $0x1], 0 }
   0x2   :  { %10 = vsyncpa [#allocation7], 0 }
   0x3   :  { %11 = vsyncpa [#allocation5], 0 }
   0x4   :  { %13 = vsyncpa [#allocation5 + $0x1], 0  ;;  %s1337_s9 = smov 0   ;;  %s1339_s10 = smov 0  }
   0x5   :  { %s1341_s11 = smov 0   ;;  %s1343_s12 = smov 0  }
   0x6   :  { %s1345_s13 = smov 0   ;;  %s1347_s14 = smov 0  }
   0x7 LB: > { %s834_s15 = sadd.s32 4294967295, %s1315_s14   ;;  %s835_s16 = sadd.s32 4294967294, %s1315_s14   ;;  %s1315_s14 = sphi %s1347_s14, %s19_s14   ;;  %s1311_s13 = sphi %s1345_s13, %s1547_s13   ;;  %s1307_s12 = sphi %s1343_s12, %s1546_s12   ;;  %s1303_s11 = sphi %s1341_s11, %s1545_s11   ;;  %s1299_s10 = sphi %s1339_s10, %s1544_s10   ;;  %s1295_s9 = sphi %s1337_s9, %s1543_s9  }
   0x8   : > { %p53_p0 = scmp.ne.s32.totalorder %s1299_s10, %s1295_s9  ;;  %p1371_p1 = scmp.eq.s32.totalorder %s834_s15, 0 }
   0x9   : > { %p1375_p2 = scmp.eq.s32.totalorder %s834_s15, 1  ;;  %p109_p3 = scmp.eq.s32.totalorder %s835_s16, 1 }
   0xa   : > { %p1381_p4 = por %p1371_p1, %p53_p0  ;;  %p836_p5 = scmp.ge.s32.totalorder %s1315_s14, 1 }
   0xb   : > { %p1386_p6 = por %p109_p3, %p53_p0  ;;  %p116_p7 = scmp.lt.s32.totalorder %s1315_s14, 3 }
   0xc   : > { %s130_s23 = sshll.u32 %s1534_s1, 4  ;;  %s1317_s25 = smov [#allocation6]   ;;  %s131_s23 = int_to_ptr.hbm [resolvable:$true] %s130_s23 }
   0xd   : > { %p1394_p8 = pnand %p836_p5, %p116_p7  ;;  %s132_s26 = sshll.u32 %s1317_s25, 4  ;;  %s133_s26 = int_to_ptr.vmem [resolvable:$true] %s132_s26 }
   0xe   : > { %p838_p11 = scmp.ge.s32.totalorder %s1315_s14, 2  ;;  %s1318_s27 = smov 64  }
   0xf   : > { %p1100_p9 = pneg %p1394_p8  ;;  %s1319_s28 = smov 4  }
  0x10   : > { %s31_s29 = sadd.s32 1, %s1311_s13  ;;  %s40_s30 = sadd.s32 1, %s1303_s11 }
  0x11   : > { %p1101_p10 = pnand %p1100_p9, %p1371_p1  ;;  %p33_p12 = scmp.ge.s32.totalorder %s31_s29, 2 }
  0x12   : > { %p47_p13 = scmp.ne.s32.totalorder %s1303_s11, %s1299_s10  ;;  %p48_p0 = scmp.eq.s32.totalorder %s1315_s14, 0 }
  0x13   : > { %1103 = dma.hbm_to_vmem [thread:$0]  (!%p1101_p10), %s131_s23, 1024, %s133_s26, [#allocation7], %s1318_s27, %s1318_s27, %s1319_s28  }
  0x14   : > { %s1549_s29 = smov (%p33_p12, %s31_s29), 0  ;;  %p1413_p3 = por %p48_p0, %p47_p13 }
  0x15   : > { %p1419_p5 = por %p1375_p2, %p47_p13  ;;  %s35_s5 = ssub.s32 %s1311_s13, %s1549_s29 }
  0x16   : > { %p1113_p7 = scmp.lt.s32.totalorder %s1315_s14, 2  ;;  %p38_p9 = scmp.eq.s32.totalorder %s35_s5, 0 }
  0x17   : > { %s146_s6 = sand.u32 1, %s1303_s11   ;;  %s947_s15 = sshll.u32 %s1311_s13, 7 }
  0x18   : > { %s839_s7 = sshll.u32 %s146_s6, 7  ;;  %s156_s22 = scalar_lea.hbm %s1533_s0, %s947_s15 }
  0x19   : > { %s1428_s8 = scalar_select %p38_p9, %s1303_s11, %s40_s30  }
  0x1a   : > { %s150_s23 = scalar_lea.vmem [#allocation3], %s839_s7  ;;  %s157_s18 = sshll.u32 %s156_s22, 4  ;;  %s158_s18 = int_to_ptr.hbm [resolvable:$true] %s157_s18 }
  0x1b   : > { %s159_s25 = sshll.u32 %s150_s23, 4  ;;  %p1105_p2 = pnand %p1113_p7, %p1413_p3  ;;  %s160_s25 = int_to_ptr.vmem [resolvable:$true] %s159_s25 }
  0x1c   : > { %s147_s26 = scalar_lea.sflag [#allocation4], %s146_s6  ;;  %171 = sbr.rel (%p1394_p8) target bundleno = 264 (0x108), region = 28 }
  0x1d   : > { %1107 = dma.hbm_to_vmem [thread:$0]  (!%p1105_p2), %s158_s18, 2048, %s160_s25, %s147_s26, %s1318_s27, %s1318_s27, %s1319_s28  }
  0x1e   : > { %s1442_s30 = sand.u32 (!%p1394_p8), 1, %s1299_s10  }
  0x1f   : > { %s843_s5 = sshll.u32 (!%p1394_p8), %s1442_s30, 7  ;;  %s174_s7 = scalar_lea.sflag (!%p1394_p8), [#allocation4], %s1442_s30 }
  0x20   : > { %s1448_s3 = scalar_lea.vmem (!%p1394_p8), [#allocation3], %s843_s5 }
  0x21   : > { %1282 = dma.done.wait (%p1381_p4), %s174_s7, 2048  }
  0x22   : > { %1284 = vsyncadd (%p1381_p4), %s174_s7, 4294965248 }
  0x23   : > { %1286 = dma.done.wait (%p1371_p1), [#allocation7], 1024  }
  0x24   : > { %1288 = vsyncadd (%p1371_p1), [#allocation7], 4294966272  ;;  %v971_v0 = vld [vmem:[#allocation6 + $0x38] sm:$0xff]  ;;  %v970_v1 = vld [vmem:[#allocation6 + $0x30] sm:$0xff]  ;;  %s1476_s17 = scalar_lea.vmem [#allocation8], %s843_s5  ;;  %s972_s19 = sshll.u32 %s1307_s12, 7 }
  0x25   : > { %399 = vmatpush.bf16.msra.mxu0 %v971_v0  ;;  %1068 = vmatpush.bf16.msra.mxu1 %v971_v0  ;;  %v969_v2 = vld [vmem:[#allocation6 + $0x28] sm:$0xff]  ;;  %v968_v3 = vld [vmem:[#allocation6 + $0x20] sm:$0xff]  ;;  %v967_v4 = vld [vmem:[#allocation6 + $0x18] sm:$0xff]  ;;  %s735_s28 = scalar_lea.hbm %s1535_s2, %s972_s19  ;;  %s736_s6 = sshll.u32 %s1476_s17, 4  ;;  %s737_s6 = int_to_ptr.vmem [resolvable:$true] %s736_s6 }
  0x26   : > { %1069 = vmatpush.bf16.msra.mxu2 %v971_v0  ;;  %1070 = vmatpush.bf16.msra.mxu3 %v971_v0  ;;  %v966_v5 = vld [vmem:[#allocation6 + $0x10] sm:$0xff]  ;;  %v965_v6 = vld [vmem:[#allocation6 + $0x8] sm:$0xff]  ;;  %v964_v7 = vld [vmem:[#allocation6] sm:$0xff]  ;;  %s738_s15 = sshll.u32 %s735_s28, 4  ;;  %s724_s12 = scalar_lea.sflag [#allocation5], %s1442_s30  ;;  %s739_s15 = int_to_ptr.hbm [resolvable:$true] %s738_s15 }
  0x27   : > { %v948_v8 = vld [vmem:[%s1448_s3] sm:$0xff]  ;;  %v949_v12 = vld [vmem:[%s1448_s3 + $0x8] sm:$0xff]  ;;  %v950_v16 = vld [vmem:[%s1448_s3 + $0x10] sm:$0xff]  ;;  %s1243_s16 = sshra.s32 %s739_s15, 4  ;;  %s1249_s25 = scalar_lea.hbm %s1535_s2, 256  ;;  %s1244_s16 = int_to_ptr.hbm [resolvable:$true] %s1243_s16 }
  0x28   : > { %v952_v9 = vld [vmem:[%s1448_s3 + $0x20] sm:$0xff]  ;;  %v953_v13 = vld [vmem:[%s1448_s3 + $0x28] sm:$0xff]  ;;  %v954_v17 = vld [vmem:[%s1448_s3 + $0x30] sm:$0xff]  ;;  %s1245_s21 = scalar_lea.hbm %s1244_s16, 128  ;;  %p1250_p10 = scmp.lt.s32.totalorder %s1244_s16, %s1535_s2 }
  0x29   : > { %400 = vmatpush.bf16.msra.mxu0 %v970_v1  ;;  %1071 = vmatpush.bf16.msra.mxu1 %v970_v1  ;;  %v956_v10 = vld [vmem:[%s1448_s3 + $0x40] sm:$0xff]  ;;  %v957_v14 = vld [vmem:[%s1448_s3 + $0x48] sm:$0xff]  ;;  %v958_v18 = vld [vmem:[%s1448_s3 + $0x50] sm:$0xff]  ;;  %p1246_p1 = scmp.ne.s32.totalorder %s1244_s16, %s1245_s21  ;;  %p1251_p12 = scmp.lt.s32.totalorder %s1249_s25, %s1245_s21 }
  0x2a   : > { %1072 = vmatpush.bf16.msra.mxu2 %v970_v1  ;;  %1073 = vmatpush.bf16.msra.mxu3 %v970_v1  ;;  %v960_v11 = vld [vmem:[%s1448_s3 + $0x60] sm:$0xff]  ;;  %v961_v15 = vld [vmem:[%s1448_s3 + $0x68] sm:$0xff]  ;;  %v962_v19 = vld [vmem:[%s1448_s3 + $0x70] sm:$0xff] }
  0x2b   : > { %v951_v20 = vld [vmem:[%s1448_s3 + $0x18] sm:$0xff]  ;;  %p1247_p4 = pnand %p1246_p1, %p1419_p5  ;;  %p1252_p13 = por %p1251_p12, %p1250_p10 }
  0x2c   : > { %v955_v21 = vld [vmem:[%s1448_s3 + $0x38] sm:$0xff] }
  0x2d   : > { %401 = vmatpush.bf16.msra.mxu0 %v969_v2  ;;  %1074 = vmatpush.bf16.msra.mxu1 %v969_v2  ;;  %v959_v22 = vld [vmem:[%s1448_s3 + $0x58] sm:$0xff]  ;;  %p1248_p8 = pneg %p1247_p4 }
  0x2e   : > { %1075 = vmatpush.bf16.msra.mxu2 %v969_v2  ;;  %1076 = vmatpush.bf16.msra.mxu3 %v969_v2  ;;  %v963_v23 = vld [vmem:[%s1448_s3 + $0x78] sm:$0xff] }
  0x2f   : > { %p1253_p0 = pnand %p1252_p13, %p1248_p8 }
  0x31   : > { %402 = vmatpush.bf16.msra.mxu0 %v968_v3  ;;  %1077 = vmatpush.bf16.msra.mxu1 %v968_v3 }
  0x32   : > { %1078 = vmatpush.bf16.msra.mxu2 %v968_v3  ;;  %1079 = vmatpush.bf16.msra.mxu3 %v968_v3 }
  0x35   : > { %403 = vmatpush.bf16.msra.mxu0 %v967_v4  ;;  %1080 = vmatpush.bf16.msra.mxu1 %v967_v4 }
  0x36   : > { %1081 = vmatpush.bf16.msra.mxu2 %v967_v4  ;;  %1082 = vmatpush.bf16.msra.mxu3 %v967_v4 }
  0x39   : > { %404 = vmatpush.bf16.msra.mxu0 %v966_v5  ;;  %1083 = vmatpush.bf16.msra.mxu1 %v966_v5 }
  0x3a   : > { %1084 = vmatpush.bf16.msra.mxu2 %v966_v5  ;;  %1085 = vmatpush.bf16.msra.mxu3 %v966_v5 }
  0x3d   : > { %405 = vmatpush.bf16.msra.mxu0 %v965_v6  ;;  %1086 = vmatpush.bf16.msra.mxu1 %v965_v6 }
  0x3e   : > { %1087 = vmatpush.bf16.msra.mxu2 %v965_v6  ;;  %1088 = vmatpush.bf16.msra.mxu3 %v965_v6 }
  0x41   : > { %406 = vmatpush.bf16.msra.mxu0 %v964_v7  ;;  %1089 = vmatpush.bf16.msra.mxu1 %v964_v7 }
  0x42   : > { %1090 = vmatpush.bf16.msra.mxu2 %v964_v7  ;;  %1091 = vmatpush.bf16.msra.mxu3 %v964_v7 }
  0x44   : > { %407 = vmatmul.bf16.vlgmr.msra.gmra.mxu0 %v948_v8  ;;  %427 = vmatmul.bf16.vlgmr.msra.gmra.mxu1 %v952_v9 }
  0x45   : > { %447 = vmatmul.bf16.vlgmr.msra.gmra.mxu2 %v956_v10  ;;  %467 = vmatmul.bf16.vlgmr.msra.gmra.mxu3 %v960_v11 }
  0x54   : > { %412 = vmatmul.bf16.gmra.mxu0 %v949_v12  ;;  %432 = vmatmul.bf16.gmra.mxu1 %v953_v13 }
  0x55   : > { %452 = vmatmul.bf16.gmra.mxu2 %v957_v14  ;;  %472 = vmatmul.bf16.gmra.mxu3 %v961_v15 }
  0x64   : > { %417 = vmatmul.bf16.gmra.mxu0 %v950_v16  ;;  %437 = vmatmul.bf16.gmra.mxu1 %v954_v17 }
  0x65   : > { %457 = vmatmul.bf16.gmra.mxu2 %v958_v18  ;;  %477 = vmatmul.bf16.gmra.mxu3 %v962_v19 }
  0x74   : > { %422 = vmatmul.bf16.gmra.mxu0 %v951_v20  ;;  %442 = vmatmul.bf16.gmra.mxu1 %v955_v21 }
  0x75   : > { %462 = vmatmul.bf16.gmra.mxu2 %v959_v22  ;;  %482 = vmatmul.bf16.gmra.mxu3 %v963_v23 }
  0xc1   : > { %v408_v24 = vpop.f32.mrf.mxu0  ;;  %v428_v25 = vpop.f32.mrf.mxu1 }
  0xc8   : > { %v448_v26 = vpop.f32.mrf.mxu2  ;;  %v468_v27 = vpop.f32.mrf.mxu3 }
  0xc9   : > { %v410_v28 = vpop.f32.mrf.mxu0  ;;  %v430_v29 = vpop.f32.mrf.mxu1 }
  0xca   : > { %v976_v30 = vpack.c.bf16 %v410_v28, %v408_v24  ;;  %v996_v31 = vpack.c.bf16 %v430_v29, %v428_v25 }
  0xcc   : > { %977 = vst [vmem:[%s1476_s17] sm:$0xff] %v976_v30  }
  0xcd   : > { %1056 = vst [vmem:[%s1476_s17 + $0x20] sm:$0xff] %v996_v31  }
  0xd0   : > { %v450_v32 = vpop.f32.mrf.mxu2  ;;  %v470_v33 = vpop.f32.mrf.mxu3 }
  0xd1   : > { %v1016_v34 = vpack.c.bf16 %v450_v32, %v448_v26  ;;  %v1036_v35 = vpack.c.bf16 %v470_v33, %v468_v27  ;;  %v413_v36 = vpop.f32.mrf.mxu0  ;;  %v433_v37 = vpop.f32.mrf.mxu1 }
  0xd3   : > { %1060 = vst [vmem:[%s1476_s17 + $0x40] sm:$0xff] %v1016_v34  }
  0xd4   : > { %1064 = vst [vmem:[%s1476_s17 + $0x60] sm:$0xff] %v1036_v35  }
  0xd8   : > { %v453_v38 = vpop.f32.mrf.mxu2  ;;  %v473_v39 = vpop.f32.mrf.mxu3 }
  0xd9   : > { %v415_v40 = vpop.f32.mrf.mxu0  ;;  %v435_v41 = vpop.f32.mrf.mxu1 }
  0xda   : > { %v981_v42 = vpack.c.bf16 %v415_v40, %v413_v36  ;;  %v1001_v43 = vpack.c.bf16 %v435_v41, %v433_v37 }
  0xdc   : > { %1053 = vst [vmem:[%s1476_s17 + $0x8] sm:$0xff] %v981_v42  }
  0xdd   : > { %1057 = vst [vmem:[%s1476_s17 + $0x28] sm:$0xff] %v1001_v43  }
  0xe0   : > { %v455_v44 = vpop.f32.mrf.mxu2  ;;  %v475_v45 = vpop.f32.mrf.mxu3 }
  0xe1   : > { %v1021_v46 = vpack.c.bf16 %v455_v44, %v453_v38  ;;  %v1041_v47 = vpack.c.bf16 %v475_v45, %v473_v39  ;;  %v418_v48 = vpop.f32.mrf.mxu0  ;;  %v438_v49 = vpop.f32.mrf.mxu1 }
  0xe3   : > { %1061 = vst [vmem:[%s1476_s17 + $0x48] sm:$0xff] %v1021_v46  }
  0xe4   : > { %1065 = vst [vmem:[%s1476_s17 + $0x68] sm:$0xff] %v1041_v47  }
  0xe8   : > { %v458_v50 = vpop.f32.mrf.mxu2  ;;  %v478_v51 = vpop.f32.mrf.mxu3 }
  0xe9   : > { %v420_v52 = vpop.f32.mrf.mxu0  ;;  %v440_v53 = vpop.f32.mrf.mxu1 }
  0xea   : > { %v986_v54 = vpack.c.bf16 %v420_v52, %v418_v48  ;;  %v1006_v55 = vpack.c.bf16 %v440_v53, %v438_v49 }
  0xec   : > { %1054 = vst [vmem:[%s1476_s17 + $0x10] sm:$0xff] %v986_v54  }
  0xed   : > { %1058 = vst [vmem:[%s1476_s17 + $0x30] sm:$0xff] %v1006_v55  }
  0xf0   : > { %v460_v56 = vpop.f32.mrf.mxu2  ;;  %v480_v57 = vpop.f32.mrf.mxu3 }
  0xf1   : > { %v1026_v58 = vpack.c.bf16 %v460_v56, %v458_v50  ;;  %v1046_v59 = vpack.c.bf16 %v480_v57, %v478_v51  ;;  %v423_v60 = vpop.f32.mrf.mxu0  ;;  %v443_v61 = vpop.f32.mrf.mxu1 }
  0xf3   : > { %1062 = vst [vmem:[%s1476_s17 + $0x50] sm:$0xff] %v1026_v58  }
  0xf4   : > { %1066 = vst [vmem:[%s1476_s17 + $0x70] sm:$0xff] %v1046_v59  }
  0xf8   : > { %v463_v62 = vpop.f32.mrf.mxu2  ;;  %v483_v63 = vpop.f32.mrf.mxu3 }
  0xf9   : > { %v425_v0 = vpop.f32.mrf.mxu0  ;;  %v445_v1 = vpop.f32.mrf.mxu1 }
  0xfa   : > { %v991_v2 = vpack.c.bf16 %v425_v0, %v423_v60  ;;  %v1011_v3 = vpack.c.bf16 %v445_v1, %v443_v61 }
  0xfc   : > { %1055 = vst [vmem:[%s1476_s17 + $0x18] sm:$0xff] %v991_v2  }
  0xfd   : > { %1059 = vst [vmem:[%s1476_s17 + $0x38] sm:$0xff] %v1011_v3  }
 0x100   : > { %v465_v4 = vpop.f32.mrf.mxu2  ;;  %v485_v5 = vpop.f32.mrf.mxu3 }
 0x101   : > { %v1031_v6 = vpack.c.bf16 %v465_v4, %v463_v62  ;;  %v1051_v7 = vpack.c.bf16 %v485_v5, %v483_v63 }
 0x103   : > { %1063 = vst [vmem:[%s1476_s17 + $0x58] sm:$0xff] %v1031_v6  }
 0x104   : > { %1067 = vst [vmem:[%s1476_s17 + $0x78] sm:$0xff] %v1051_v7  }
 0x105   : > { %1256 = shalt.err (!%p1253_p0)
}
 0x106   : > { %s1320_s30 = smov 64   ;;  %s1321_s5 = smov 4  }
 0x107   : > { %1098 = dma.vmem_to_hbm [thread:$0]  (%p1419_p5), %s737_s6, 2048, %s739_s15, %s724_s12, %s1320_s30, %s1320_s30, %s1321_s5  }
 0x108 PF: > { %s753_s7 = sand.u32 1, %s1295_s9   ;;  %p1109_p3 = pnand %p838_p11, %p1386_p6 }
 0x109   : > { %s754_s3 = scalar_lea.sflag [#allocation5], %s753_s7 }
 0x10a   : > { %p1110_p7 = pneg %p1109_p3 }
 0x10c   : > { %1290 = dma.done.wait (%p1110_p7), %s754_s3, 2048  }
 0x10d   : > { %1292 = vsyncadd (%p1110_p7), %s754_s3, 4294965248  ;;  %s19_s14 = sadd.s32 1, %s1315_s14   ;;  %s1543_s9 = smov %s1299_s10 }
 0x10e   : > { %p16_p9 = scmp.ge.s32.totalorder %s19_s14, 4   ;;  %s1544_s10 = smov %s1303_s11 }
 0x10f   : > { %s1545_s11 = smov %s1428_s8  ;;  %s1546_s12 = smov %s1311_s13 }
 0x110   : > { %s1547_s13 = smov %s1549_s29  ;;  %18 = sbr.rel (!%p16_p9) target bundleno = 7 (0x7), region = 90 }
 0x115   :  { %760 = vsyncpa [#allocation4], 1 }
 0x116   :  { %762 = vsyncpa [#allocation4 + $0x1], 1 }
 0x117   :  { %763 = vsyncpa [#allocation7], 1 }
 0x118   :  { %764 = vsyncpa [#allocation5], 1 }
 0x119   :  { %766 = vsyncpa [#allocation5 + $0x1], 1 }

</bundles_post_ra>
